<compile_context>
chip_gen: v7x
topology: tpu7x:2x2x1
jax: 0.10.0
libtpu: 0.0.40
codegen_flags: <defaults>
</compile_context>

<pallas_src>
import functools

import jax
import jax.numpy as jnp
from jax.experimental import pallas as pl
from jax.experimental.pallas import tpu as pltpu


def _round_up(x, m):
    return ((x + m - 1) // m) * m


def critic_kernel(xc_ref, wc_ref, b1_ref, w2h_ref, b2_ref, w3_ref, b3_ref,
                  out_ref):
    """One batch tile. Batch lives on the LANE axis for every intermediate."""
    h1_dim = b1_ref.shape[0]                       # 256

    # Single MXU pass over the block-diagonal weight:
    #   z[:256, :]  = W1   @ obs^T   (FC1 pre-activation)
    #   z[256:, :]  = W2_a @ acts^T  (acts contribution to FC2)
    z = jnp.dot(wc_ref[...], xc_ref[...], preferred_element_type=jnp.float32)

    h1 = jnp.maximum(z[:h1_dim, :] + b1_ref[...], 0.0)        # (256, TB), f32
    h1 = h1.astype(w2h_ref.dtype)

    # FC2: the only MXU-friendly GEMM (K=256), plus the precomputed acts term.
    h2 = (jnp.dot(w2h_ref[...], h1, preferred_element_type=jnp.float32)
          + z[h1_dim:, :] + b2_ref[...])
    h2 = jnp.maximum(h2, 0.0)                                  # (64, TB), f32

    # FC3 (64 -> 1): VPU multiply + sublane (XLU) reduction -> lane-dense
    # (1, TB) output, no wasted MXU pass, unmasked stores.
    q = jnp.sum(h2 * w3_ref[...], axis=0, keepdims=True) + b3_ref[0]
    out_ref[...] = q.astype(out_ref.dtype)


@functools.partial(jax.jit, static_argnames=("block_b",))
def critic_forward(obs, acts, prepared, *, block_b=2048):
    """obs: (B, obs_dim), acts: (B, act_dim) -> (B, 1) float32."""
    wc, b1, w2h, b2, w3, b3 = prepared
    B = obs.shape[0]
    D = wc.shape[1]                               # obs_dim + act_dim
    h1_dim = b1.shape[0]                          # 256
    h2_dim = b2.shape[0]                          # 64

    # Lane-dense combined input: (obs_dim + act_dim, B); batch on lanes.
    xc = jnp.concatenate([obs, acts], axis=1).T.astype(wc.dtype)

    # Batch tiling: big tiles to amortize the ~0.35us/step pipeline overhead,
    # but always >= 2 grid steps once b_pad >= 256 so v7x's two TensorCores
    # both get work under dimension_semantics=("parallel",).
    if B >= 256:
        b_pad = _round_up(B, 128)
        tb = min(block_b, _round_up(b_pad // 2, 128))
        b_pad = _round_up(b_pad, tb)
    else:
        b_pad = _round_up(B, 8)
        tb = b_pad
    if b_pad != B:
        xc = jnp.pad(xc, ((0, 0), (0, b_pad - B)))
    grid = (b_pad // tb,)

    def nbytes(a):
        return a.size * a.dtype.itemsize

    cost = pl.CostEstimate(
        flops=2 * b_pad * (D * (h1_dim + h2_dim) + h1_dim * h2_dim + h2_dim),
        transcendentals=0,
        bytes_accessed=(nbytes(xc) + nbytes(wc) + nbytes(b1) + nbytes(w2h)
                        + nbytes(b2) + nbytes(w3) + nbytes(b3) + b_pad * 4))

    out_row = pl.pallas_call(
        critic_kernel,
        out_shape=jax.ShapeDtypeStruct((1, b_pad), jnp.float32),
        grid=grid,
        in_specs=[
            pl.BlockSpec((D, tb), lambda i: (0, i)),                 # combined input tile
            pl.BlockSpec((h1_dim + h2_dim, D), lambda i: (0, 0)),    # Wc      resident
            pl.BlockSpec((h1_dim, 1), lambda i: (0, 0)),             # b1      resident
            pl.BlockSpec((h2_dim, h1_dim), lambda i: (0, 0)),        # W2_h^T  resident
            pl.BlockSpec((h2_dim, 1), lambda i: (0, 0)),             # b2      resident
            pl.BlockSpec((h2_dim, 1), lambda i: (0, 0)),             # w3      resident
            pl.BlockSpec(memory_space=pltpu.MemorySpace.SMEM),       # b3 scalar
        ],
        out_specs=pl.BlockSpec((1, tb), lambda i: (0, i)),           # lane-dense out
        compiler_params=pltpu.CompilerParams(
            dimension_semantics=("parallel",)),
        cost_estimate=cost,
    )(xc, wc, b1, w2h, b2, w3, b3)

    return out_row[0, :B].reshape(B, 1)


def init_critic_params(key, n_agent, dim_observation, dim_action):
    """PyTorch nn.Linear-style params: W (out, in), b (out,), U[-1/sqrt(fan_in), +]."""
    obs_dim = dim_observation * n_agent
    act_dim = dim_action * n_agent

    def linear(key, fan_in, fan_out):
        kw, kb = jax.random.split(key)
        bound = 1.0 / (fan_in ** 0.5)
        w = jax.random.uniform(kw, (fan_out, fan_in), jnp.float32, -bound, bound)
        b = jax.random.uniform(kb, (fan_out,), jnp.float32, -bound, bound)
        return w, b

    k1, k2, k3 = jax.random.split(key, 3)
    w1, b1 = linear(k1, obs_dim, 256)
    w2, b2 = linear(k2, 256 + act_dim, 64)
    w3, b3 = linear(k3, 64, 1)
    return (w1, b1, w2, b2, w3, b3)


def prepare_critic_params(raw, obs_dim, *, compute_dtype=jnp.float32):
    """Hoisted (once per params) preprocessing into kernel-ready layout.

    compute_dtype controls the MXU operand dtype; float32 is the safe default
    (bf16 is a valid choice on real v6e/v7x hardware if throughput matters).
    """
    w1, b1, w2, b2, w3, b3 = raw
    h1_dim = w1.shape[0]                           # 256
    h2_dim = w2.shape[0]                           # 64
    act_dim = w2.shape[1] - h1_dim

    w2h = w2[:, :h1_dim]                           # (64, 256)
    w2a = w2[:, h1_dim:]                           # (64, act_dim)

    # Block-diagonal [[W1, 0], [0, W2_a]] -> one MXU pass computes both the
    # FC1 pre-activation and the acts contribution to FC2.
    wc = jnp.zeros((h1_dim + h2_dim, obs_dim + act_dim), jnp.float32)
    wc = wc.at[:h1_dim, :obs_dim].set(w1)
    wc = wc.at[h1_dim:, obs_dim:].set(w2a)

    return (wc.astype(compute_dtype),
            b1.reshape(h1_dim, 1).astype(jnp.float32),
            w2h.astype(compute_dtype),
            b2.reshape(h2_dim, 1).astype(jnp.float32),
            w3.reshape(h2_dim, 1).astype(jnp.float32),
            b3.reshape(1).astype(jnp.float32))


def critic_reference(obs, acts, raw):
    """Plain-JAX f32 reference matching the PyTorch module."""
    w1, b1, w2, b2, w3, b3 = raw
    h1 = jnp.maximum(obs @ w1.T + b1, 0.0)
    h2 = jnp.maximum(jnp.concatenate([h1, acts], axis=1) @ w2.T + b2, 0.0)
    return h2 @ w3.T + b3


if __name__ == "__main__":
    n_agent = 2
    dim_observation = 8
    dim_action = 4

    obs_dim = dim_observation * n_agent   # 16
    act_dim = dim_action * n_agent        # 8

    key = jax.random.PRNGKey(0)
    kp, ko, ka, ko2, ka2 = jax.random.split(key, 5)

    raw = init_critic_params(kp, n_agent, dim_observation, dim_action)
    prepared = prepare_critic_params(raw, obs_dim)

    # 1) small batch: single grid step, lane dim == full extent.
    batch = 8
    obs = jax.random.normal(ko, (batch, obs_dim), jnp.float32)
    acts = jax.random.normal(ka, (batch, act_dim), jnp.float32)
    out = jax.block_until_ready(critic_forward(obs, acts, prepared))
    ref = critic_reference(obs, acts, raw)
    assert out.shape == (batch, 1), out.shape
    assert jnp.allclose(out, ref, atol=1e-4, rtol=1e-4), (out, ref)

    # 2) larger batch: batch padding + multi-step "parallel" batch grid
    #    (300 -> padded to 2 x 256-row lane-dense tiles).
    big = 300
    obs_b = jax.random.normal(ko2, (big, obs_dim), jnp.float32)
    acts_b = jax.random.normal(ka2, (big, act_dim), jnp.float32)
    out_b = jax.block_until_ready(critic_forward(obs_b, acts_b, prepared))
    ref_b = critic_reference(obs_b, acts_b, raw)
    assert out_b.shape == (big, 1), out_b.shape
    assert jnp.allclose(out_b, ref_b, atol=1e-4, rtol=1e-4)

    print("KERNEL_OK")
</pallas_src>

<mosaic_0001>
module attributes {stable_mosaic.version = 11 : i64} {
  func.func @critic_kernel(%arg0: i32, %arg1: memref<24x8xf32, #tpu.memory_space<vmem>>, %arg2: memref<320x24xf32, #tpu.memory_space<vmem>>, %arg3: memref<256x1xf32, #tpu.memory_space<vmem>>, %arg4: memref<64x256xf32, #tpu.memory_space<vmem>>, %arg5: memref<64x1xf32, #tpu.memory_space<vmem>>, %arg6: memref<64x1xf32, #tpu.memory_space<vmem>>, %arg7: memref<1xf32, #tpu.memory_space<smem>>, %arg8: memref<1x8xf32, #tpu.memory_space<vmem>>) attributes {dimension_semantics = [#tpu.dimension_semantics<parallel>], iteration_bounds = array<i64: 1>, scalar_prefetch = 0 : i64, scratch_operands = 0 : i64, tpu.core_type = #tpu.core_type<tc>, window_params = [{transform_indices = @transform_0, window_bounds = array<i64: 24, 8>}, {pipeline_mode = #tpu.pipeline_mode<synchronous>, transform_indices = @transform_1, window_bounds = array<i64: 320, 24>}, {pipeline_mode = #tpu.pipeline_mode<synchronous>, transform_indices = @transform_2, window_bounds = array<i64: 256, 1>}, {pipeline_mode = #tpu.pipeline_mode<synchronous>, transform_indices = @transform_3, window_bounds = array<i64: 64, 256>}, {pipeline_mode = #tpu.pipeline_mode<synchronous>, transform_indices = @transform_4, window_bounds = array<i64: 64, 1>}, {pipeline_mode = #tpu.pipeline_mode<synchronous>, transform_indices = @transform_5, window_bounds = array<i64: 64, 1>}, {transform_indices = @transform_6, window_bounds = array<i64: 1>}, {transform_indices = @transform_7, window_bounds = array<i64: 1, 8>}]} {
    %c0 = arith.constant 0 : index
    %c0_0 = arith.constant 0 : index
    %0 = vector.load %arg2[%c0, %c0_0] : memref<320x24xf32, #tpu.memory_space<vmem>>, vector<320x24xf32>
    %c0_1 = arith.constant 0 : index
    %c0_2 = arith.constant 0 : index
    %1 = vector.load %arg1[%c0_1, %c0_2] : memref<24x8xf32, #tpu.memory_space<vmem>>, vector<24x8xf32>
    %cst = arith.constant dense<0.000000e+00> : vector<320x8xf32>
    %2 = tpu.matmul %0, %1, %cst {dimension_numbers = #tpu.dot_dimension_numbers<[1], [0], [0], [1], [0, 0, 1, 1], [], []>} : vector<320x24xf32>, vector<24x8xf32>, vector<320x8xf32> -> vector<320x8xf32>
    %3 = vector.extract_strided_slice %2 {offsets = [0, 0], sizes = [256, 8], strides = [1, 1]} : vector<320x8xf32> to vector<256x8xf32>
    %c0_3 = arith.constant 0 : index
    %c0_4 = arith.constant 0 : index
    %4 = vector.load %arg3[%c0_3, %c0_4] : memref<256x1xf32, #tpu.memory_space<vmem>>, vector<256x1xf32>
    %5 = vector.broadcast %4 : vector<256x1xf32> to vector<256x8xf32>
    %6 = arith.addf %3, %5 : vector<256x8xf32>
    %cst_5 = arith.constant 0.000000e+00 : f32
    %7 = vector.broadcast %cst_5 : f32 to vector<256x8xf32>
    %8 = arith.maximumf %6, %7 : vector<256x8xf32>
    %c0_6 = arith.constant 0 : index
    %c0_7 = arith.constant 0 : index
    %9 = vector.load %arg4[%c0_6, %c0_7] : memref<64x256xf32, #tpu.memory_space<vmem>>, vector<64x256xf32>
    %cst_8 = arith.constant dense<0.000000e+00> : vector<64x8xf32>
    %10 = tpu.matmul %9, %8, %cst_8 {dimension_numbers = #tpu.dot_dimension_numbers<[1], [0], [0], [1], [0, 0, 1, 1], [], []>} : vector<64x256xf32>, vector<256x8xf32>, vector<64x8xf32> -> vector<64x8xf32>
    %11 = vector.extract_strided_slice %2 {offsets = [256, 0], sizes = [64, 8], strides = [1, 1]} : vector<320x8xf32> to vector<64x8xf32>
    %12 = arith.addf %10, %11 : vector<64x8xf32>
    %c0_9 = arith.constant 0 : index
    %c0_10 = arith.constant 0 : index
    %13 = vector.load %arg5[%c0_9, %c0_10] : memref<64x1xf32, #tpu.memory_space<vmem>>, vector<64x1xf32>
    %14 = vector.broadcast %13 : vector<64x1xf32> to vector<64x8xf32>
    %15 = arith.addf %12, %14 : vector<64x8xf32>
    %cst_11 = arith.constant 0.000000e+00 : f32
    %16 = vector.broadcast %cst_11 : f32 to vector<64x8xf32>
    %17 = arith.maximumf %15, %16 : vector<64x8xf32>
    %c0_12 = arith.constant 0 : index
    %c0_13 = arith.constant 0 : index
    %18 = vector.load %arg6[%c0_12, %c0_13] : memref<64x1xf32, #tpu.memory_space<vmem>>, vector<64x1xf32>
    %19 = vector.broadcast %18 : vector<64x1xf32> to vector<64x8xf32>
    %20 = arith.mulf %17, %19 : vector<64x8xf32>
    %cst_14 = arith.constant dense<0.000000e+00> : vector<8xf32>
    %21 = vector.multi_reduction <add>, %20, %cst_14 [0] : vector<64x8xf32> to vector<8xf32>
    %22 = vector.shape_cast %21 : vector<8xf32> to vector<1x8xf32>
    %c0_15 = arith.constant 0 : index
    %23 = memref.load %arg7[%c0_15] : memref<1xf32, #tpu.memory_space<smem>>
    %24 = vector.broadcast %23 : f32 to vector<1x8xf32>
    %25 = arith.addf %22, %24 : vector<1x8xf32>
    %c0_16 = arith.constant 0 : index
    %c0_17 = arith.constant 0 : index
    %26 = vector.load %arg8[%c0_16, %c0_17] : memref<1x8xf32, #tpu.memory_space<vmem>>, vector<1x8xf32>
    tpu.vector_store %arg8[%c0_16, %c0_17], %25 {strides = array<i32>} : memref<1x8xf32, #tpu.memory_space<vmem>>, vector<1x8xf32>,
    return
  }
  func.func @transform_0(%arg0: i32) -> (i32, i32) {
    %c0_i32 = arith.constant 0 : i32
    %c0_i32_0 = arith.constant 0 : i32
    return %c0_i32, %arg0 : i32, i32
  }
  func.func @transform_1(%arg0: i32) -> (i32, i32) {
    %c0_i32 = arith.constant 0 : i32
    %c0_i32_0 = arith.constant 0 : i32
    %c0_i32_1 = arith.constant 0 : i32
    return %c0_i32, %c0_i32_0 : i32, i32
  }
  func.func @transform_2(%arg0: i32) -> (i32, i32) {
    %c0_i32 = arith.constant 0 : i32
    %c0_i32_0 = arith.constant 0 : i32
    %c0_i32_1 = arith.constant 0 : i32
    return %c0_i32, %c0_i32_0 : i32, i32
  }
  func.func @transform_3(%arg0: i32) -> (i32, i32) {
    %c0_i32 = arith.constant 0 : i32
    %c0_i32_0 = arith.constant 0 : i32
    %c0_i32_1 = arith.constant 0 : i32
    return %c0_i32, %c0_i32_0 : i32, i32
  }
  func.func @transform_4(%arg0: i32) -> (i32, i32) {
    %c0_i32 = arith.constant 0 : i32
    %c0_i32_0 = arith.constant 0 : i32
    %c0_i32_1 = arith.constant 0 : i32
    return %c0_i32, %c0_i32_0 : i32, i32
  }
  func.func @transform_5(%arg0: i32) -> (i32, i32) {
    %c0_i32 = arith.constant 0 : i32
    %c0_i32_0 = arith.constant 0 : i32
    %c0_i32_1 = arith.constant 0 : i32
    return %c0_i32, %c0_i32_0 : i32, i32
  }
  func.func @transform_6(%arg0: i32) -> i32 {
    %c0_i32 = arith.constant 0 : i32
    %c0_i32_0 = arith.constant 0 : i32
    return %c0_i32 : i32
  }
  func.func @transform_7(%arg0: i32) -> (i32, i32) {
    %c0_i32 = arith.constant 0 : i32
    %c0_i32_0 = arith.constant 0 : i32
    return %c0_i32, %arg0 : i32, i32
  }
}

</mosaic_0001>

<bundles_post_ra>
// kernel: critic_forward.1
= control target key start
LH: loop header
LB: loop body
LE: loop exit
PB: predicated region body
PF: predicated region fallthrough
CT: control target
= control target key end

     0   :  { %vm71_vm0 = vcmask 195584   ;;  %v1264_v3 = vmov 0   ;;  %s1768_s0 = inlined_call_operand.vmem [shape: f32[24,8], index: 0, kind: input, shape index: {}]   ;;  %s1769_s1 = inlined_call_operand.vmem [shape: f32[320,24], index: 1, kind: input, shape index: {}]   ;;  %s1770_s2 = inlined_call_operand.vmem [shape: f32[256,1], index: 2, kind: input, shape index: {}]   ;;  %s1771_s3 = inlined_call_operand.vmem [shape: f32[64,256], index: 3, kind: input, shape index: {}]   ;;  %s1772_s4 = inlined_call_operand.vmem [shape: f32[64,1], index: 4, kind: input, shape index: {}]   ;;  %s1773_s5 = inlined_call_operand.vmem [shape: f32[64,1], index: 5, kind: input, shape index: {}]   ;;  %s1774_s6 = inlined_call_operand.<no memory space> [shape: f32[1], index: 6, kind: input, shape index: {}]   ;;  %s1775_s7 = inlined_call_operand.hbm [shape: f32[1,8], index: 7, kind: output, shape index: {}]  }
   0x1   :  { %v473_v0 = vld [vmem:[%s1770_s2 + $0x80] sm:$0xff]  ;;  %1239 = vset.pattern.permute.xlu1 %v1264_v3  ;;  %1238 = vset.pattern.permute.xlu0 %v1264_v3  ;;  %v69_v4 = vld [vmem:[%s1768_s0 + $0x8] sm:$0xff]  ;;  %v70_v9 = vld [vmem:[%s1768_s0 + $0x10] sm:$0xff] }
   0x2   :  { %v457_v1 = vld [vmem:[%s1770_s2] sm:$0xff]  ;;  %571 = vperm.xlu0 %1238, %v473_v0   ;;  %v474_v7 = vld [vmem:[%s1770_s2 + $0x88] sm:$0xff]  ;;  %v475_v11 = vld [vmem:[%s1770_s2 + $0x90] sm:$0xff] }
   0x3   :  { %v68_v2 = vld [vmem:[%s1768_s0] sm:$0xff]  ;;  %491 = vperm.xlu1 %1239, %v457_v1   ;;  %v458_v8 = vld [vmem:[%s1770_s2 + $0x8] sm:$0xff]  ;;  %v476_v12 = vld [vmem:[%s1770_s2 + $0x98] sm:$0xff] }
   0x4   :  { %v1200_v5 = vpack.c.bf16 %v69_v4, %v68_v2  ;;  %v28_v6 = vld [vmem:[%s1769_s1] sm:$0xff]  ;;  %v29_v10 = vld [vmem:[%s1769_s1 + $0x8] sm:$0xff]  ;;  %v30_v13 = vld [vmem:[%s1769_s1 + $0x10] sm:$0xff] }
   0x5   :  { %1140 = vmatprep.mubr.msk.f32.mxu0 %vm71_vm0, %v28_v6  ;;  %v31_v14 = vld [vmem:[%s1769_s1 + $0x18] sm:$0xff]  ;;  %v459_v15 = vld [vmem:[%s1770_s2 + $0x10] sm:$0xff]  ;;  %v32_v17 = vld [vmem:[%s1769_s1 + $0x20] sm:$0xff] }
   0x6   :  { %1201 = vmatprep.subr.bf16.mxu0 %v1200_v5  ;;  %576 = vperm.xlu0 %1238, %v474_v7   ;;  %v460_v16 = vld [vmem:[%s1770_s2 + $0x18] sm:$0xff]  ;;  %v33_v18 = vld [vmem:[%s1769_s1 + $0x28] sm:$0xff]  ;;  %v477_v19 = vld [vmem:[%s1770_s2 + $0xa0] sm:$0xff] }
   0x7   :  { %1203 = vmatpush3.bf16.msra.mxu0 %v1200_v5  ;;  %496 = vperm.xlu1 %1239, %v458_v8   ;;  %v478_v20 = vld [vmem:[%s1770_s2 + $0xa8] sm:$0xff]  ;;  %v34_v21 = vld [vmem:[%s1769_s1 + $0x30] sm:$0xff]  ;;  %v35_v22 = vld [vmem:[%s1769_s1 + $0x38] sm:$0xff] }
   0x8   :  { %1138 = vmatprep.subr.mxu0 %v70_v9  ;;  %v461_v23 = vld [vmem:[%s1770_s2 + $0x20] sm:$0xff]  ;;  %v462_v24 = vld [vmem:[%s1770_s2 + $0x28] sm:$0xff]  ;;  %v479_v27 = vld [vmem:[%s1770_s2 + $0xb0] sm:$0xff] }
   0x9   :  { %v36_v25 = vld [vmem:[%s1769_s1 + $0x40] sm:$0xff]  ;;  %v37_v26 = vld [vmem:[%s1769_s1 + $0x48] sm:$0xff]  ;;  %v480_v28 = vld [vmem:[%s1770_s2 + $0xb8] sm:$0xff] }
   0xa   :  { %581 = vperm.xlu0 %1238, %v475_v11   ;;  %v38_v29 = vld [vmem:[%s1769_s1 + $0x50] sm:$0xff]  ;;  %v39_v30 = vld [vmem:[%s1769_s1 + $0x58] sm:$0xff] }
   0xb   :  { %1139 = vmatpush3.msra.mxu0 %v70_v9  ;;  %586 = vperm.xlu1 %1239, %v476_v12   ;;  %v463_v31 = vld [vmem:[%s1770_s2 + $0x30] sm:$0xff] }
   0xc   :  { %1141 = vmatmul.mubr.msk.f32.vlgmr.msra.gmra.mrb[0].mxu0 %vm71_vm0, %v29_v10 }
   0xd   :  { %1143 = vmatprep.mubr.msk.f32.mxu0 %vm71_vm0, %v30_v13 }
   0xe   :  { %501 = vperm.xlu0 %1238, %v459_v15  }
   0xf   :  { %506 = vperm.xlu1 %1239, %v460_v16  }
  0x10   :  { %1144 = vmatmul.mubr.msk.f32.gmra.mrb[2].mxu0 %vm71_vm0, %v31_v14 }
  0x11   :  { %1146 = vmatprep.mubr.msk.f32.mxu0 %vm71_vm0, %v32_v17 }
  0x12   :  { %591 = vperm.xlu0 %1238, %v477_v19  }
  0x13   :  { %596 = vperm.xlu1 %1239, %v478_v20  }
  0x14   :  { %1147 = vmatmul.mubr.msk.f32.gmra.mrb[4].mxu0 %vm71_vm0, %v33_v18 }
  0x15   :  { %1149 = vmatprep.mubr.msk.f32.mxu0 %vm71_vm0, %v34_v21 }
  0x16   :  { %511 = vperm.xlu0 %1238, %v461_v23  }
  0x17   :  { %516 = vperm.xlu1 %1239, %v462_v24  }
  0x18   :  { %1150 = vmatmul.mubr.msk.f32.gmra.mrb[6].mxu0 %vm71_vm0, %v35_v22 }
  0x19   :  { %1152 = vmatprep.mubr.msk.f32.mxu0 %vm71_vm0, %v36_v25 }
  0x1a   :  { %601 = vperm.xlu0 %1238, %v479_v27  }
  0x1b   :  { %606 = vperm.xlu1 %1239, %v480_v28  }
  0x1c   :  { %1153 = vmatmul.mubr.msk.f32.gmra.mrb[8].mxu0 %vm71_vm0, %v37_v26 }
  0x1d   :  { %1155 = vmatprep.mubr.msk.f32.mxu0 %vm71_vm0, %v38_v29 }
  0x1e   :  { %13 = vsyncpa [#allocation4], 0  ;;  %v464_v32 = vld [vmem:[%s1770_s2 + $0x38] sm:$0xff]  ;;  %v40_v33 = vld [vmem:[%s1769_s1 + $0x60] sm:$0xff]  ;;  %521 = vperm.xlu0 %1238, %v463_v31   ;;  %vm954_vm1 = vcmask 64512   ;;  %s1265_s14 = smov [#allocation3]  }
  0x1f   :  { %526 = vperm.xlu1 %1239, %v464_v32   ;;  %v41_v34 = vld [vmem:[%s1769_s1 + $0x68] sm:$0xff]  ;;  %v481_v35 = vld [vmem:[%s1770_s2 + $0xc0] sm:$0xff]  ;;  %v42_v37 = vld [vmem:[%s1769_s1 + $0x70] sm:$0xff]  ;;  %s987_s15 = sshll.u32 %s1265_s14, 4  ;;  %vm979_vm2 = vcmask 57344   ;;  %s988_s15 = int_to_ptr.vmem [resolvable:$true] %s987_s15 }
  0x20   :  { %1156 = vmatmul.mubr.msk.f32.gmra.mrb[10].mxu0 %vm71_vm0, %v39_v30  ;;  %v482_v36 = vld [vmem:[%s1770_s2 + $0xc8] sm:$0xff]  ;;  %v43_v38 = vld [vmem:[%s1769_s1 + $0x78] sm:$0xff]  ;;  %v465_v39 = vld [vmem:[%s1770_s2 + $0x40] sm:$0xff]  ;;  %s1240_s16 = scalar_lea.vmem %s988_s15, 16  ;;  %s1244_s17 = scalar_lea.vmem %s988_s15, 32 }
  0x21   :  { %1158 = vmatprep.mubr.msk.f32.mxu0 %vm71_vm0, %v40_v33  ;;  %v466_v40 = vld [vmem:[%s1770_s2 + $0x48] sm:$0xff]  ;;  %v44_v41 = vld [vmem:[%s1769_s1 + $0x80] sm:$0xff]  ;;  %v483_v43 = vld [vmem:[%s1770_s2 + $0xd0] sm:$0xff]  ;;  %p1241_p0 = scmp.ne.s32.totalorder %s988_s15, %s1240_s16  ;;  %p1245_p1 = scmp.lt.s32.totalorder %s988_s15, %s988_s15 }
  0x22   :  { %611 = vperm.xlu0 %1238, %v481_v35   ;;  %v45_v42 = vld [vmem:[%s1769_s1 + $0x88] sm:$0xff]  ;;  %v484_v44 = vld [vmem:[%s1770_s2 + $0xd8] sm:$0xff]  ;;  %v46_v45 = vld [vmem:[%s1769_s1 + $0x90] sm:$0xff]  ;;  %p1246_p2 = scmp.lt.s32.totalorder %s1244_s17, %s1240_s16 }
  0x23   :  { %616 = vperm.xlu1 %1239, %v482_v36   ;;  %v47_v46 = vld [vmem:[%s1769_s1 + $0x98] sm:$0xff]  ;;  %v467_v47 = vld [vmem:[%s1770_s2 + $0x50] sm:$0xff]  ;;  %v48_v49 = vld [vmem:[%s1769_s1 + $0xa0] sm:$0xff] }
  0x24   :  { %1159 = vmatmul.mubr.msk.f32.gmra.mrb[12].mxu0 %vm71_vm0, %v41_v34  ;;  %v468_v48 = vld [vmem:[%s1770_s2 + $0x58] sm:$0xff]  ;;  %v49_v50 = vld [vmem:[%s1769_s1 + $0xa8] sm:$0xff]  ;;  %v485_v51 = vld [vmem:[%s1770_s2 + $0xe0] sm:$0xff]  ;;  %p1247_p3 = por %p1246_p2, %p1245_p1 }
  0x25   :  { %1161 = vmatprep.mubr.msk.f32.mxu0 %vm71_vm0, %v42_v37  ;;  %v486_v52 = vld [vmem:[%s1770_s2 + $0xe8] sm:$0xff]  ;;  %v50_v53 = vld [vmem:[%s1769_s1 + $0xb0] sm:$0xff]  ;;  %v51_v54 = vld [vmem:[%s1769_s1 + $0xb8] sm:$0xff] }
  0x26   :  { %531 = vperm.xlu0 %1238, %v465_v39   ;;  %v469_v55 = vld [vmem:[%s1770_s2 + $0x60] sm:$0xff]  ;;  %v470_v56 = vld [vmem:[%s1770_s2 + $0x68] sm:$0xff]  ;;  %v487_v59 = vld [vmem:[%s1770_s2 + $0xf0] sm:$0xff]  ;;  %p1248_p4 = pnand %p1247_p3, %p1241_p0 }
  0x27   :  { %536 = vperm.xlu1 %1239, %v466_v40   ;;  %v52_v57 = vld [vmem:[%s1769_s1 + $0xc0] sm:$0xff]  ;;  %v53_v58 = vld [vmem:[%s1769_s1 + $0xc8] sm:$0xff]  ;;  %v488_v60 = vld [vmem:[%s1770_s2 + $0xf8] sm:$0xff] }
  0x28   :  { %1162 = vmatmul.mubr.msk.f32.gmra.mrb[14].mxu0 %vm71_vm0, %v43_v38  ;;  %v54_v61 = vld [vmem:[%s1769_s1 + $0xd0] sm:$0xff]  ;;  %v55_v62 = vld [vmem:[%s1769_s1 + $0xd8] sm:$0xff]  ;;  %v56_v1 = vld [vmem:[%s1769_s1 + $0xe0] sm:$0xff] }
  0x29   :  { %1164 = vmatprep.mubr.msk.f32.mxu0 %vm71_vm0, %v44_v41  ;;  %v471_v63 = vld [vmem:[%s1770_s2 + $0x70] sm:$0xff]  ;;  %v472_v0 = vld [vmem:[%s1770_s2 + $0x78] sm:$0xff]  ;;  %v57_v2 = vld [vmem:[%s1769_s1 + $0xe8] sm:$0xff] }
  0x2a   :  { %621 = vperm.xlu0 %1238, %v483_v43   ;;  %v834_v3 = vld [vmem:[%s1772_s4] sm:$0xff]  ;;  %v835_v4 = vld [vmem:[%s1772_s4 + $0x8] sm:$0xff]  ;;  %v58_v5 = vld [vmem:[%s1769_s1 + $0xf0] sm:$0xff] }
  0x2b   :  { %626 = vperm.xlu1 %1239, %v484_v44   ;;  %v59_v6 = vld [vmem:[%s1769_s1 + $0xf8] sm:$0xff]  ;;  %v836_v7 = vld [vmem:[%s1772_s4 + $0x10] sm:$0xff]  ;;  %v898_v9 = vld [vmem:[%s1773_s5] sm:$0xff] }
  0x2c   :  { %1165 = vmatmul.mubr.msk.f32.gmra.mrb[16].mxu0 %vm71_vm0, %v45_v42  ;;  %v837_v8 = vld [vmem:[%s1772_s4 + $0x18] sm:$0xff]  ;;  %v899_v10 = vld [vmem:[%s1773_s5 + $0x8] sm:$0xff]  ;;  %v838_v11 = vld [vmem:[%s1772_s4 + $0x20] sm:$0xff] }
  0x2d   :  { %1167 = vmatprep.mubr.msk.f32.mxu0 %vm71_vm0, %v46_v45  ;;  %v900_v12 = vld [vmem:[%s1773_s5 + $0x10] sm:$0xff]  ;;  %v839_v13 = vld [vmem:[%s1772_s4 + $0x28] sm:$0xff]  ;;  %v901_v14 = vld [vmem:[%s1773_s5 + $0x18] sm:$0xff] }
  0x2e   :  { %541 = vperm.xlu0 %1238, %v467_v47   ;;  %v840_v15 = vld [vmem:[%s1772_s4 + $0x30] sm:$0xff]  ;;  %v902_v16 = vld [vmem:[%s1773_s5 + $0x20] sm:$0xff]  ;;  %v841_v17 = vld [vmem:[%s1772_s4 + $0x38] sm:$0xff] }
  0x2f   :  { %546 = vperm.xlu1 %1239, %v468_v48   ;;  %v903_v18 = vld [vmem:[%s1773_s5 + $0x28] sm:$0xff]  ;;  %v904_v19 = vld [vmem:[%s1773_s5 + $0x30] sm:$0xff]  ;;  %v905_v20 = vld [vmem:[%s1773_s5 + $0x38] sm:$0xff] }
  0x30   :  { %1168 = vmatmul.mubr.msk.f32.gmra.mrb[18].mxu0 %vm71_vm0, %v47_v46  ;;  %v714_v23 = vld [vmem:[%s1771_s3 + $0x8] sm:$0xff]  ;;  %v60_v25 = vld [vmem:[%s1769_s1 + $0x100] sm:$0xff]  ;;  %v62_v30 = vld [vmem:[%s1769_s1 + $0x110] sm:$0xff] }
  0x31   :  { %1170 = vmatprep.mubr.msk.f32.mxu0 %vm71_vm0, %v48_v49  ;;  %793 = vmatprep.mubr.f32.mxu1 %v714_v23  ;;  %v61_v26 = vld [vmem:[%s1769_s1 + $0x108] sm:$0xff]  ;;  %v63_v31 = vld [vmem:[%s1769_s1 + $0x118] sm:$0xff]  ;;  %v64_v34 = vld [vmem:[%s1769_s1 + $0x120] sm:$0xff] }
  0x32   :  { %631 = vperm.xlu0 %1238, %v485_v51   ;;  %v65_v35 = vld [vmem:[%s1769_s1 + $0x128] sm:$0xff]  ;;  %v66_v39 = vld [vmem:[%s1769_s1 + $0x130] sm:$0xff]  ;;  %v67_v40 = vld [vmem:[%s1769_s1 + $0x138] sm:$0xff] }
  0x33   :  { %636 = vperm.xlu1 %1239, %v486_v52  }
  0x34   :  { %1171 = vmatmul.mubr.msk.f32.gmra.mrb[20].mxu0 %vm71_vm0, %v49_v50 }
  0x35   :  { %1173 = vmatprep.mubr.msk.f32.mxu0 %vm71_vm0, %v50_v53 }
  0x36   :  { %551 = vperm.xlu0 %1238, %v469_v55  }
  0x37   :  { %556 = vperm.xlu1 %1239, %v470_v56  }
  0x38   :  { %1174 = vmatmul.mubr.msk.f32.gmra.mrb[22].mxu0 %vm71_vm0, %v51_v54 }
  0x39   :  { %1176 = vmatprep.mubr.msk.f32.mxu0 %vm71_vm0, %v52_v57 }
  0x3a   :  { %641 = vperm.xlu0 %1238, %v487_v59  }
  0x3b   :  { %646 = vperm.xlu1 %1239, %v488_v60  }
  0x3c   :  { %1177 = vmatmul.mubr.msk.f32.gmra.mrb[24].mxu0 %vm71_vm0, %v53_v58 }
  0x3d   :  { %1179 = vmatprep.mubr.msk.f32.mxu0 %vm71_vm0, %v54_v61 }
  0x3e   :  { %561 = vperm.xlu0 %1238, %v471_v63  }
  0x3f   :  { %566 = vperm.xlu1 %1239, %v472_v0  }
  0x40   :  { %1180 = vmatmul.mubr.msk.f32.gmra.mrb[26].mxu0 %vm71_vm0, %v55_v62 }
  0x41   :  { %1182 = vmatprep.mubr.msk.f32.mxu0 %vm71_vm0, %v56_v1 }
  0x42   :  { %844 = vperm.xlu0 %1238, %v834_v3  }
  0x43   :  { %849 = vperm.xlu1 %1239, %v835_v4  }
  0x44   :  { %1183 = vmatmul.mubr.msk.f32.gmra.mrb[28].mxu0 %vm71_vm0, %v57_v2 }
  0x45   :  { %1185 = vmatprep.mubr.msk.f32.mxu0 %vm71_vm0, %v58_v5 }
  0x46   :  { %854 = vperm.xlu0 %1238, %v836_v7  }
  0x47   :  { %859 = vperm.xlu1 %1239, %v837_v8  }
  0x48   :  { %1186 = vmatmul.mubr.msk.f32.gmra.mrb[30].mxu0 %vm71_vm0, %v59_v6 }
  0x49   :  { %1188 = vmatprep.mubr.msk.f32.mxu0 %vm71_vm0, %v60_v25 }
  0x4a   :  { %908 = vperm.xlu0 %1238, %v898_v9  }
  0x4b   :  { %913 = vperm.xlu1 %1239, %v899_v10  }
  0x4c   :  { %1189 = vmatmul.mubr.msk.f32.gmra.mrb[32].mxu0 %vm71_vm0, %v61_v26 }
  0x4d   :  { %1191 = vmatprep.mubr.msk.f32.mxu0 %vm71_vm0, %v62_v30 }
  0x4e   :  { %864 = vperm.xlu0 %1238, %v838_v11  }
  0x4f   :  { %918 = vperm.xlu1 %1239, %v900_v12  }
  0x50   :  { %1192 = vmatmul.mubr.msk.f32.gmra.mrb[34].mxu0 %vm71_vm0, %v63_v31 }
  0x51   :  { %1194 = vmatprep.mubr.msk.f32.mxu0 %vm71_vm0, %v64_v34 }
  0x52   :  { %869 = vperm.xlu0 %1238, %v839_v13  }
  0x53   :  { %923 = vperm.xlu1 %1239, %v901_v14  }
  0x54   :  { %1195 = vmatmul.mubr.msk.f32.gmra.mrb[36].mxu0 %vm71_vm0, %v65_v35 }
  0x55   :  { %1197 = vmatprep.mubr.msk.f32.mxu0 %vm71_vm0, %v66_v39 }
  0x56   :  { %874 = vperm.xlu0 %1238, %v840_v15  }
  0x57   :  { %928 = vperm.xlu1 %1239, %v902_v16  }
  0x58   :  { %1198 = vmatmul.mubr.msk.f32.gmra.mrb[38].mxu0 %vm71_vm0, %v67_v40 }
  0x5a   :  { %879 = vperm.xlu0 %1238, %v841_v17  }
  0x5b   :  { %933 = vperm.xlu1 %1239, %v903_v18  }
  0x5e   :  { %938 = vperm.xlu0 %1238, %v904_v19  }
  0x5f   :  { %943 = vperm.xlu1 %1239, %v905_v20  }
  0x81   :  { %v1587_v22 = vpop.permute.xlu0 %571 }
  0x82   :  { %v492_v21 = vpop.permute.xlu1 %491 }
  0x85   :  { %v1598_v27 = vpop.permute.xlu0 %576 }
  0x86   :  { %v497_v24 = vpop.permute.xlu1 %496 }
  0x89   :  { %v1604_v29 = vpop.permute.xlu0 %581 }
  0x8a   :  { %v1602_v28 = vpop.permute.xlu1 %586 }
  0x8d   :  { %v502_v33 = vpop.permute.xlu0 %501 }
  0x8e   :  { %v507_v32 = vpop.permute.xlu1 %506 }
  0x91   :  { %v1624_v37 = vpop.permute.xlu0 %591 }
  0x92   :  { %v1621_v36 = vpop.permute.xlu1 %596 }
  0x95   :  { %v512_v41 = vpop.permute.xlu0 %511 }
  0x96   :  { %v517_v38 = vpop.permute.xlu1 %516 }
  0x99   :  { %v1636_v43 = vpop.permute.xlu0 %601 }
  0x9a   :  { %v1634_v42 = vpop.permute.xlu1 %606 }
  0x9d   :  { %v522_v45 = vpop.permute.xlu0 %521 }
  0x9e   :  { %v527_v44 = vpop.permute.xlu1 %526 }
  0xa1   :  { %v1640_v47 = vpop.permute.xlu0 %611 }
  0xa2   :  { %v1638_v46 = vpop.permute.xlu1 %616 }
  0xa5   :  { %v532_v49 = vpop.permute.xlu0 %531 }
  0xa6   :  { %v537_v48 = vpop.permute.xlu1 %536 }
  0xa9   :  { %v1644_v51 = vpop.permute.xlu0 %621 }
  0xaa   :  { %v1642_v50 = vpop.permute.xlu1 %626 }
  0xad   :  { %v542_v60 = vpop.permute.xlu0 %541 }
  0xae   :  { %v547_v57 = vpop.permute.xlu1 %546 }
  0xb1   :  { %v1652_v9 = vpop.permute.xlu0 %631 }
  0xb2   :  { %v1648_v6 = vpop.permute.xlu1 %636 }
  0xb6   :  { %v557_v18 = vpop.permute.xlu1 %556 }
  0xba   :  { %v1658_v35 = vpop.permute.xlu1 %646 }
  0xdf   :  { %v1142_v52 = vpop.f32.mrb[0].mxu0 }
  0xe0   :  { %v650_v53 = vadd.f32 %v1142_v52, %v497_v24  ;;  %v258_v54 = vpop.f32.mrb[1].mxu0 }
  0xe1   :  { %v649_v55 = vadd.f32 %v492_v21, %v258_v54  ;;  %v552_v21 = vpop.permute.xlu0 %551 }
  0xe2   :  { %v682_v56 = vmax.f32 %v650_v53, 0.0 }
  0xe3   :  { %v681_v58 = vmax.f32 %v649_v55, 0.0  ;;  %v1145_v59 = vpop.f32.mrb[2].mxu0  ;;  %v567_v55 = vpop.permute.xlu1 %566 }
  0xe4   :  { %v652_v61 = vadd.f32 %v1145_v59, %v507_v32  ;;  %v268_v62 = vpop.f32.mrb[3].mxu0 }
  0xe5   :  { %v651_v63 = vadd.f32 %v502_v33, %v268_v62  ;;  %v1646_v0 = vpack.c.bf16 %v682_v56, %v681_v58  ;;  %v1662_v40 = vpop.permute.xlu0 %641 }
  0xe6   :  { %v684_v1 = vmax.f32 %v652_v61, 0.0 }
  0xe7   :  { %v683_v2 = vmax.f32 %v651_v63, 0.0  ;;  %v1148_v3 = vpop.f32.mrb[4].mxu0 }
  0xe8   :  { %v654_v4 = vadd.f32 %v1148_v3, %v517_v38  ;;  %v278_v5 = vpop.f32.mrb[5].mxu0 }
  0xe9   :  { %v1650_v7 = vpack.c.bf16 %v684_v1, %v683_v2  ;;  %v653_v8 = vadd.f32 %v512_v41, %v278_v5  ;;  %v562_v58 = vpop.permute.xlu0 %561 }
  0xea   :  { %v686_v10 = vmax.f32 %v654_v4, 0.0 }
  0xeb   :  { %v685_v11 = vmax.f32 %v653_v8, 0.0  ;;  %v1151_v12 = vpop.f32.mrb[6].mxu0 }
  0xec   :  { %v656_v13 = vadd.f32 %v1151_v12, %v527_v44  ;;  %v288_v14 = vpop.f32.mrb[7].mxu0 }
  0xed   :  { %v1654_v15 = vpack.c.bf16 %v686_v10, %v685_v11  ;;  %v655_v16 = vadd.f32 %v522_v45, %v288_v14 }
  0xee   :  { %v688_v17 = vmax.f32 %v656_v13, 0.0 }
  0xef   :  { %v687_v19 = vmax.f32 %v655_v16, 0.0  ;;  %v1154_v20 = vpop.f32.mrb[8].mxu0 }
  0xf0   :  { %v658_v23 = vadd.f32 %v1154_v20, %v537_v48  ;;  %v298_v24 = vpop.f32.mrb[9].mxu0 }
  0xf1   :  { %v1656_v25 = vpack.c.bf16 %v688_v17, %v687_v19  ;;  %v657_v26 = vadd.f32 %v532_v49, %v298_v24 }
  0xf2   :  { %v690_v30 = vmax.f32 %v658_v23, 0.0 }
  0xf3   :  { %v689_v31 = vmax.f32 %v657_v26, 0.0  ;;  %v1157_v32 = vpop.f32.mrb[10].mxu0 }
  0xf4   :  { %v660_v33 = vadd.f32 %v1157_v32, %v547_v57  ;;  %v308_v34 = vpop.f32.mrb[11].mxu0 }
  0xf5   :  { %v1660_v38 = vpack.c.bf16 %v690_v30, %v689_v31  ;;  %v659_v39 = vadd.f32 %v542_v60, %v308_v34 }
  0xf6   :  { %v692_v41 = vmax.f32 %v660_v33, 0.0 }
  0xf7   :  { %v691_v44 = vmax.f32 %v659_v39, 0.0  ;;  %v1160_v45 = vpop.f32.mrb[12].mxu0 }
  0xf8   :  { %v662_v48 = vadd.f32 %v1160_v45, %v557_v18  ;;  %v318_v52 = vpop.f32.mrb[13].mxu0 }
  0xf9   :  { %v1664_v53 = vpack.c.bf16 %v692_v41, %v691_v44  ;;  %v661_v49 = vadd.f32 %v552_v21, %v318_v52 }
  0xfa   :  { %v694_v54 = vmax.f32 %v662_v48, 0.0 }
  0xfb   :  { %v693_v56 = vmax.f32 %v661_v49, 0.0  ;;  %v1163_v57 = vpop.f32.mrb[14].mxu0 }
  0xfc   :  { %v664_v59 = vadd.f32 %v1163_v57, %v567_v55  ;;  %v328_v61 = vpop.f32.mrb[15].mxu0 }
  0xfd   :  { %v1666_v62 = vpack.c.bf16 %v694_v54, %v693_v56  ;;  %v663_v60 = vadd.f32 %v562_v58, %v328_v61 }
  0xfe   :  { %v696_v63 = vmax.f32 %v664_v59, 0.0 }
  0xff   :  { %v695_v1 = vmax.f32 %v663_v60, 0.0  ;;  %v1166_v2 = vpop.f32.mrb[16].mxu0 }
 0x100   :  { %v666_v3 = vadd.f32 %v1166_v2, %v1598_v27  ;;  %v338_v4 = vpop.f32.mrb[17].mxu0  ;;  %v722_v2 = vld [vmem:[%s1771_s3 + $0x48] sm:$0xff] }
 0x101   :  { %v1669_v5 = vpack.c.bf16 %v696_v63, %v695_v1  ;;  %v665_v8 = vadd.f32 %v1587_v22, %v338_v4  ;;  %v720_v63 = vld [vmem:[%s1771_s3 + $0x38] sm:$0xff]  ;;  %v719_v1 = vld [vmem:[%s1771_s3 + $0x30] sm:$0xff] }
 0x102   :  { %v698_v10 = vmax.f32 %v666_v3, 0.0  ;;  %v721_v3 = vld [vmem:[%s1771_s3 + $0x40] sm:$0xff]  ;;  %v724_v4 = vld [vmem:[%s1771_s3 + $0x58] sm:$0xff] }
 0x103   :  { %v697_v11 = vmax.f32 %v665_v8, 0.0  ;;  %v1169_v12 = vpop.f32.mrb[18].mxu0  ;;  %v726_v8 = vld [vmem:[%s1771_s3 + $0x68] sm:$0xff] }
 0x104   :  { %v668_v13 = vadd.f32 %v1169_v12, %v1602_v28  ;;  %v348_v14 = vpop.f32.mrb[19].mxu0  ;;  %v727_v12 = vld [vmem:[%s1771_s3 + $0x70] sm:$0xff] }
 0x105   :  { %v667_v16 = vadd.f32 %v1604_v29, %v348_v14  ;;  %v1204_v17 = vpack.c.bf16 %v698_v10, %v697_v11  ;;  %v725_v10 = vld [vmem:[%s1771_s3 + $0x60] sm:$0xff]  ;;  %v728_v11 = vld [vmem:[%s1771_s3 + $0x78] sm:$0xff] }
 0x106   :  { %v700_v18 = vmax.f32 %v668_v13, 0.0 }
 0x107   :  { %v699_v19 = vmax.f32 %v667_v16, 0.0  ;;  %v1172_v20 = vpop.f32.mrb[20].mxu0  ;;  %1205 = vmatprep.subr.bf16.mxu1 %v1204_v17 }
 0x108   :  { %v670_v27 = vadd.f32 %v1172_v20, %v1621_v36  ;;  %v358_v21 = vpop.f32.mrb[21].mxu0  ;;  %1207 = vmatpush3.bf16.msra.mxu1 %v1646_v0 }
 0x109   :  { %v1208_v23 = vpack.c.bf16 %v700_v18, %v699_v19  ;;  %v669_v22 = vadd.f32 %v1624_v37, %v358_v21  ;;  %v845_v21 = vpop.permute.xlu0 %844 }
 0x10a   :  { %v702_v24 = vmax.f32 %v670_v27, 0.0 }
 0x10b   :  { %v701_v26 = vmax.f32 %v669_v22, 0.0  ;;  %v1175_v30 = vpop.f32.mrb[22].mxu0  ;;  %1209 = vmatprep.subr.bf16.mxu1 %v1208_v23  ;;  %v850_v23 = vpop.permute.xlu1 %849 }
 0x10c   :  { %v672_v28 = vadd.f32 %v1175_v30, %v1634_v42  ;;  %v368_v29 = vpop.f32.mrb[23].mxu0  ;;  %1211 = vmatpush3.bf16.msra.mxu1 %v1650_v7 }
 0x10d   :  { %v1212_v31 = vpack.c.bf16 %v702_v24, %v701_v26  ;;  %v671_v32 = vadd.f32 %v1636_v43, %v368_v29  ;;  %v855_v22 = vpop.permute.xlu0 %854 }
 0x10e   :  { %v704_v33 = vmax.f32 %v672_v28, 0.0 }
 0x10f   :  { %v703_v36 = vmax.f32 %v671_v32, 0.0  ;;  %v1178_v34 = vpop.f32.mrb[24].mxu0  ;;  %1213 = vmatprep.subr.bf16.mxu1 %v1212_v31  ;;  %v860_v24 = vpop.permute.xlu1 %859 }
 0x110   :  { %v674_v0 = vadd.f32 %v1178_v34, %v1638_v46  ;;  %v378_v39 = vpop.f32.mrb[25].mxu0  ;;  %1215 = vmatpush3.bf16.msra.mxu1 %v1654_v15 }
 0x111   :  { %v1216_v37 = vpack.c.bf16 %v704_v33, %v703_v36  ;;  %v673_v41 = vadd.f32 %v1640_v47, %v378_v39  ;;  %v909_v29 = vpop.permute.xlu0 %908 }
 0x112   :  { %v706_v44 = vmax.f32 %v674_v0, 0.0 }
 0x113   :  { %v705_v42 = vmax.f32 %v673_v41, 0.0  ;;  %v1181_v45 = vpop.f32.mrb[26].mxu0  ;;  %1217 = vmatprep.subr.bf16.mxu1 %v1216_v37  ;;  %v914_v33 = vpop.permute.xlu1 %913 }
 0x114   :  { %v676_v7 = vadd.f32 %v1181_v45, %v1642_v50  ;;  %v388_v48 = vpop.f32.mrb[27].mxu0  ;;  %1219 = vmatpush3.bf16.msra.mxu1 %v1656_v25 }
 0x115   :  { %v1220_v43 = vpack.c.bf16 %v706_v44, %v705_v42  ;;  %v675_v52 = vadd.f32 %v1644_v51, %v388_v48  ;;  %v865_v44 = vpop.permute.xlu0 %864 }
 0x116   :  { %v708_v49 = vmax.f32 %v676_v7, 0.0 }
 0x117   :  { %v707_v46 = vmax.f32 %v675_v52, 0.0  ;;  %v1184_v54 = vpop.f32.mrb[28].mxu0  ;;  %1221 = vmatprep.subr.bf16.mxu1 %v1220_v43  ;;  %v919_v48 = vpop.permute.xlu1 %918 }
 0x118   :  { %v678_v15 = vadd.f32 %v1184_v54, %v1648_v6  ;;  %v398_v55 = vpop.f32.mrb[29].mxu0  ;;  %1223 = vmatpush3.bf16.msra.mxu1 %v1660_v38 }
 0x119   :  { %v1224_v47 = vpack.c.bf16 %v708_v49, %v707_v46  ;;  %v677_v56 = vadd.f32 %v1652_v9, %v398_v55  ;;  %v713_v9 = vld [vmem:[%s1771_s3] sm:$0xff] }
 0x11a   :  { %v710_v57 = vmax.f32 %v678_v15, 0.0 }
 0x11b   :  { %v709_v50 = vmax.f32 %v677_v56, 0.0  ;;  %v1187_v58 = vpop.f32.mrb[30].mxu0  ;;  %1225 = vmatprep.subr.bf16.mxu1 %v1224_v47  ;;  %v870_v56 = vpop.permute.xlu0 %869 }
 0x11c   :  { %v680_v25 = vadd.f32 %v1187_v58, %v1658_v35  ;;  %v408_v59 = vpop.f32.mrb[31].mxu0  ;;  %1227 = vmatpush3.bf16.msra.mxu1 %v1664_v53  ;;  %v716_v35 = vld [vmem:[%s1771_s3 + $0x18] sm:$0xff]  ;;  %v718_v53 = vld [vmem:[%s1771_s3 + $0x28] sm:$0xff] }
 0x11d   :  { %v1228_v51 = vpack.c.bf16 %v710_v57, %v709_v50  ;;  %v679_v61 = vadd.f32 %v1662_v40, %v408_v59  ;;  %v715_v40 = vld [vmem:[%s1771_s3 + $0x10] sm:$0xff] }
 0x11e   :  { %v712_v60 = vmax.f32 %v680_v25, 0.0 }
 0x11f   :  { %v711_v6 = vmax.f32 %v679_v61, 0.0  ;;  %1229 = vmatprep.subr.bf16.mxu1 %v1228_v51  ;;  %v1190_v13 = vpop.f32.mrb[32].mxu0  ;;  %v924_v51 = vpop.permute.xlu1 %923 }
 0x120   :  { %1231 = vmatpush3.bf16.msra.mxu1 %v1666_v62  ;;  %v717_v62 = vld [vmem:[%s1771_s3 + $0x20] sm:$0xff]  ;;  %v418_v14 = vpop.f32.mrb[33].mxu0 }
 0x121   :  { %v1232_v38 = vpack.c.bf16 %v712_v60, %v711_v6 }
 0x123   :  { %1233 = vmatprep.subr.bf16.mxu1 %v1232_v38  ;;  %v1193_v16 = vpop.f32.mrb[34].mxu0 }
 0x124   :  { %1235 = vmatpush3.bf16.msra.mxu1 %v1669_v5  ;;  %v723_v5 = vld [vmem:[%s1771_s3 + $0x50] sm:$0xff]  ;;  %v428_v17 = vpop.f32.mrb[35].mxu0 }
 0x127   :  { %794 = vmatmul.mubr.f32.vlgmr.msra.gmra.mrb[0].mxu1 %v713_v9  ;;  %v1196_v18 = vpop.f32.mrb[36].mxu0 }
 0x128   :  { %798 = vmatprep.mubr.f32.mxu1 %v716_v35  ;;  %v438_v19 = vpop.f32.mrb[37].mxu0 }
 0x12b   :  { %799 = vmatmul.mubr.f32.gmra.mrb[2].mxu1 %v715_v40  ;;  %v1739_v20 = vpop.f32.mrb[38].mxu0 }
 0x12c   :  { %803 = vmatprep.mubr.f32.mxu1 %v718_v53  ;;  %v1741_v27 = vpop.f32.mrb[39].mxu0 }
 0x12f   :  { %804 = vmatmul.mubr.f32.gmra.mrb[4].mxu1 %v717_v62 }
 0x130   :  { %808 = vmatprep.mubr.f32.mxu1 %v720_v63  ;;  %v875_v63 = vpop.permute.xlu0 %874 }
 0x133   :  { %809 = vmatmul.mubr.f32.gmra.mrb[6].mxu1 %v719_v1 }
 0x134   :  { %813 = vmatprep.mubr.f32.mxu1 %v722_v2 }
 0x137   :  { %814 = vmatmul.mubr.f32.gmra.mrb[8].mxu1 %v721_v3 }
 0x138   :  { %818 = vmatprep.mubr.f32.mxu1 %v724_v4 }
 0x13b   :  { %819 = vmatmul.mubr.f32.gmra.mrb[10].mxu1 %v723_v5 }
 0x13c   :  { %823 = vmatprep.mubr.f32.mxu1 %v726_v8  ;;  %v929_v8 = vpop.permute.xlu1 %928 }
 0x13f   :  { %824 = vmatmul.mubr.f32.gmra.mrb[12].mxu1 %v725_v10 }
 0x140   :  { %828 = vmatprep.mubr.f32.mxu1 %v728_v11 }
 0x143   :  { %829 = vmatmul.mubr.f32.gmra.mrb[14].mxu1 %v727_v12 }
 0x1fa   :  { %v1110_v26 = vpop.f32.mrb[0].mxu1 }
 0x1fb   :  { %v1111_v30 = vpop.f32.mrb[1].mxu1 }
 0x1fc   :  { %v1112_v28 = vadd.f32 %v1111_v30, %v1110_v26 }
 0x1fe   :  { %v796_v31 = vadd.f32 %v1112_v28, %v418_v14  ;;  %v1113_v32 = vpop.f32.mrb[2].mxu1  ;;  %v934_v28 = vpop.permute.xlu1 %933 }
 0x1ff   :  { %v1114_v36 = vpop.f32.mrb[3].mxu1 }
 0x200   :  { %v882_v34 = vadd.f32 %v845_v21, %v796_v31  ;;  %v1115_v0 = vadd.f32 %v1114_v36, %v1113_v32 }
 0x202   :  { %v890_v39 = vmax.f32 %v882_v34, 0.0  ;;  %v801_v37 = vadd.f32 %v1190_v13, %v1115_v0  ;;  %v1116_v41 = vpop.f32.mrb[4].mxu1 }
 0x203   :  { %v1117_v42 = vpop.f32.mrb[5].mxu1 }
 0x204   :  { %v883_v45 = vadd.f32 %v850_v23, %v801_v37  ;;  %v1118_v7 = vadd.f32 %v1117_v42, %v1116_v41  ;;  %v946_v43 = vmul.f32 %v909_v29, %v890_v39 }
 0x206   :  { %v891_v52 = vmax.f32 %v883_v45, 0.0  ;;  %v806_v49 = vadd.f32 %v1118_v7, %v428_v17  ;;  %v1119_v46 = vpop.f32.mrb[6].mxu1  ;;  %v955_v57 = vsel %vm954_vm1, %v946_v43, 0.0 }
 0x207   :  { %v1120_v54 = vpop.f32.mrb[7].mxu1 }
 0x208   :  { %v947_v15 = vmul.f32 %v914_v33, %v891_v52  ;;  %v884_v55 = vadd.f32 %v855_v22, %v806_v49  ;;  %v1121_v47 = vadd.f32 %v1120_v54, %v1119_v46  ;;  %v880_v22 = vpop.permute.xlu0 %879 }
 0x20a   :  { %v956_v50 = vsel %vm954_vm1, %v947_v15, 0.0  ;;  %v892_v58 = vmax.f32 %v884_v55, 0.0  ;;  %v811_v25 = vadd.f32 %v1193_v16, %v1121_v47  ;;  %v1122_v59 = vpop.f32.mrb[8].mxu1 }
 0x20b   :  { %v957_v61 = vadd.f32 %v956_v50, %v955_v57  ;;  %v1123_v60 = vpop.f32.mrb[9].mxu1 }
 0x20c   :  { %v948_v6 = vmul.f32 %v919_v48, %v892_v58  ;;  %v885_v38 = vadd.f32 %v860_v24, %v811_v25  ;;  %v1124_v9 = vadd.f32 %v1123_v60, %v1122_v59  ;;  %v939_v39 = vpop.permute.xlu0 %938 }
 0x20e   :  { %v958_v35 = vsel %vm954_vm1, %v948_v6, 0.0  ;;  %v893_v40 = vmax.f32 %v885_v38, 0.0  ;;  %v816_v53 = vadd.f32 %v1124_v9, %v438_v19  ;;  %v1125_v62 = vpop.f32.mrb[10].mxu1 }
 0x20f   :  { %v959_v1 = vadd.f32 %v958_v35, %v957_v61  ;;  %v1126_v2 = vpop.f32.mrb[11].mxu1 }
 0x210   :  { %v949_v3 = vmul.f32 %v924_v51, %v893_v40  ;;  %v886_v4 = vadd.f32 %v865_v44, %v816_v53  ;;  %v1127_v5 = vadd.f32 %v1126_v2, %v1125_v62 }
 0x212   :  { %v960_v10 = vsel %vm954_vm1, %v949_v3, 0.0  ;;  %v894_v11 = vmax.f32 %v886_v4, 0.0  ;;  %v821_v12 = vadd.f32 %v1196_v18, %v1127_v5  ;;  %v1128_v13 = vpop.f32.mrb[12].mxu1 }
 0x213   :  { %v961_v14 = vadd.f32 %v960_v10, %v959_v1  ;;  %v1129_v16 = vpop.f32.mrb[13].mxu1 }
 0x214   :  { %v950_v17 = vmul.f32 %v929_v8, %v894_v11  ;;  %v887_v21 = vadd.f32 %v870_v56, %v821_v12  ;;  %v1130_v23 = vadd.f32 %v1129_v16, %v1128_v13 }
 0x216   :  { %v962_v19 = vsel %vm954_vm1, %v950_v17, 0.0  ;;  %v895_v24 = vmax.f32 %v887_v21, 0.0  ;;  %v826_v26 = vadd.f32 %v1130_v23, %v1741_v27  ;;  %v1131_v30 = vpop.f32.mrb[14].mxu1  ;;  %v944_v27 = vpop.permute.xlu1 %943 }
 0x217   :  { %v963_v29 = vadd.f32 %v962_v19, %v961_v14  ;;  %v1132_v31 = vpop.f32.mrb[15].mxu1 }
 0x218   :  { %v951_v32 = vmul.f32 %v934_v28, %v895_v24  ;;  %v888_v33 = vadd.f32 %v875_v63, %v826_v26  ;;  %v1133_v36 = vadd.f32 %v1132_v31, %v1131_v30 }
 0x21a   :  { %v964_v18 = vsel %vm954_vm1, %v951_v32, 0.0  ;;  %v896_v34 = vmax.f32 %v888_v33, 0.0  ;;  %v831_v0 = vadd.f32 %v1739_v20, %v1133_v36  ;;  %v977_v20 = vstv %s1774_s6 }
 0x21b   :  { %v965_v37 = vadd.f32 %v964_v18, %v963_v29 }
 0x21c   :  { %v952_v41 = vmul.f32 %v939_v39, %v896_v34  ;;  %v889_v44 = vadd.f32 %v880_v22, %v831_v0 }
 0x21e   :  { %v966_v42 = vsel %vm954_vm1, %v952_v41, 0.0  ;;  %v897_v45 = vmax.f32 %v889_v44, 0.0 }
 0x21f   :  { %v967_v7 = vadd.f32 %v966_v42, %v965_v37 }
 0x220   :  { %v953_v48 = vmul.f32 %v944_v27, %v897_v45 }
 0x222   :  { %v968_v43 = vsel %vm954_vm1, %v953_v48, 0.0 }
 0x223   :  { %v969_v52 = vadd.f32 %v968_v43, %v967_v7 }
 0x225   :  { %v970_v49 = vrot.slane %v969_v52, 4 }
 0x227   :  { %v971_v46 = vadd.f32 %v970_v49, %v969_v52 }
 0x229   :  { %v972_v54 = vrot.slane %v971_v46, 2 }
 0x22b   :  { %v973_v15 = vadd.f32 %v972_v54, %v971_v46 }
 0x22d   :  { %v974_v55 = vrot.slane %v973_v15, 1 }
 0x22f   :  { %v975_v47 = vadd.f32 %v974_v55, %v973_v15 }
 0x231   :  { %v978_v56 = vadd.f32 %v977_v20, %v975_v47 }
 0x233   :  { %980 = vst.msk [vmem:[#allocation3] sm:$0x1] %vm979_vm2, %v978_v56 }
 0x234   :  { %1251 = shalt.err (!%p1248_p4)
}
 0x235   :  { %s1252_s20 = scalar_lea.hbm %s1775_s7, 16 }
 0x236   :  { %p1253_p5 = scmp.ne.s32.totalorder %s1775_s7, %s1252_s20  ;;  %p1256_p6 = scmp.lt.u32.totalorder %s1252_s20, %s1775_s7 }
 0x238   :  { %p1258_p7 = pnand %p1256_p6, %p1253_p5 }
 0x23a   :  { %1261 = shalt.err (!%p1258_p7)
}
 0x23b   :  { %990 = dma.vmem_to_hbm [thread:$0]  %s988_s15, 16, %s1775_s7, [#allocation4]  }
 0x23c   :  { %1262 = dma.done.wait [#allocation4], 16  }
 0x23d   :  { %1263 = vsyncadd [#allocation4], 4294967280 }
 0x23e   :  { %994 = vsyncpa [#allocation4], 1 }

</bundles_post_ra>
